<compile_context>
chip_gen: v5e
topology: v5e:2x2
jax: 0.10.0
libtpu: 0.0.40
codegen_flags: <defaults>
</compile_context>

<pallas_src>
import functools

import jax
import jax.numpy as jnp
from jax.experimental import pallas as pl
from jax.experimental.pallas import tpu as pltpu


def _round_up(x, m):
    return (x + m - 1) // m * m


def _lambda_fused_kernel(zdims, x_ref, w_ref, b_ref, out_ref):
    """out[:, :Z]      = x @ W[:, :Z] + b[:, :Z]              (mean)
       out[:, Z:2Z]    = softplus(x @ W[:, Z:2Z] + b[:, Z:2Z]) (logvar)
       out[:, 2Z:pad]  = don't-care lane padding (sliced off in the wrapper)."""
    x = x_ref[...]                                                  # (rows, H) f32

    # Single fused GEMM on the MXU, bias add on the VPU.
    y = jnp.dot(x, w_ref[...], preferred_element_type=jnp.float32) + b_ref[...]

    # Softplus (torch.nn.Softplus beta=1, threshold=20) on the whole tile, then
    # selected for the logvar/padding lanes via a lane mask (no narrow lane
    # slicing in-kernel).  Cheap at this width, not "hidden under the MXU".
    sp = jnp.where(y > 20.0, y, jnp.log1p(jnp.exp(jnp.minimum(y, 20.0))))
    col = jax.lax.broadcasted_iota(jnp.int32, y.shape, 1)
    out_ref[...] = jnp.where(col >= zdims, sp, y).astype(out_ref.dtype)


def lambda_legacy_forward(cell_output, w_fused, b_fused, zdims, row_tile=8192):
    """cell_output: (B, hid_dim) f32
       w_fused:     (hid_dim, 2*ZDIMS)  = [W_mean.T | W_logvar.T]
       b_fused:     (1, 2*ZDIMS)        = [b_mean   | b_logvar]
       returns (latent_mean, latent_mean, latent_logvar)  -- eval-mode signature.
    """
    B, H = cell_output.shape
    Z2 = w_fused.shape[1]

    # Lane-dense output: pad the fused head to a multiple of 128 lanes so the
    # kernel's stores are unmasked full-width vst.  (8 KiB of extra weight bytes.)
    n_pad = max(128, _round_up(Z2, 128))
    if n_pad != Z2:
        w_fused = jnp.pad(w_fused, ((0, 0), (0, n_pad - Z2)))
        b_fused = jnp.pad(b_fused, ((0, 0), (0, n_pad - Z2)))

    out_shape = jax.ShapeDtypeStruct((B, n_pad), jnp.float32)
    kernel = functools.partial(_lambda_fused_kernel, zdims)

    if B > row_tile:
        # Very large batch only: row-tiled grid, ragged last tile via pl.cdiv.
        grid = (pl.cdiv(B, row_tile),)
        # Explicit scoped-VMEM budget: double-buffered x + out tiles, plus the
        # (constant-index, fetched-once) weights/bias, plus margin.  Keeps large
        # row tiles compiling under v5e's 16 MiB scoped default.
        vmem_needed = (2 * row_tile * H * 4            # x tile, double-buffered
                       + 2 * row_tile * n_pad * 4      # out tile, double-buffered
                       + 2 * (H * n_pad + n_pad) * 4   # weights + bias buffers
                       + (4 << 20))                    # internal scratch margin
        vmem_limit = max(int(vmem_needed), 16 << 20)

        fused = pl.pallas_call(
            kernel,
            out_shape=out_shape,
            grid=grid,
            in_specs=[
                pl.BlockSpec((row_tile, H), lambda i: (i, 0)),   # x row tile
                pl.BlockSpec((H, n_pad), lambda i: (0, 0)),      # fused weights (constant)
                pl.BlockSpec((1, n_pad), lambda i: (0, 0)),      # fused bias (constant)
            ],
            out_specs=pl.BlockSpec((row_tile, n_pad), lambda i: (i, 0)),
            # "parallel" is near-free; genuine 2-TC (v7x) sharding would use
            # CORE_PARALLEL / core_map and only pays with multi-MiB per-core tiles,
            # which row_tile=8192 (~6 MiB in+out per tile) satisfies.
            compiler_params=pltpu.CompilerParams(
                dimension_semantics=("parallel",),
                vmem_limit_bytes=vmem_limit,
            ),
        )(cell_output, w_fused, b_fused)
    else:
        # Default path (covers small AND moderate batches, e.g. B=512): single
        # VMEM-resident block, no grid / pipeline per-step overhead.
        fused = pl.pallas_call(
            kernel,
            out_shape=out_shape,
            in_specs=[
                pl.BlockSpec(memory_space=pltpu.MemorySpace.VMEM),
                pl.BlockSpec(memory_space=pltpu.MemorySpace.VMEM),
                pl.BlockSpec(memory_space=pltpu.MemorySpace.VMEM),
            ],
            out_specs=pl.BlockSpec(memory_space=pltpu.MemorySpace.VMEM),
        )(cell_output, w_fused, b_fused)

    # In a full model these slices should stay lazy / fuse into the consumer; here
    # they are the module's return contract.
    mean = fused[:, :zdims]
    logvar = fused[:, zdims:Z2]
    # Eval-mode return signature: (latent_mean, latent_mean, latent_logvar)
    return mean, mean, logvar


def _reference(cell_output, w_mean_oi, b_mean, w_logvar_oi, b_logvar):
    ref_mean = cell_output @ w_mean_oi.T + b_mean
    lv = cell_output @ w_logvar_oi.T + b_logvar
    ref_logvar = jnp.where(lv > 20.0, lv, jnp.log1p(jnp.exp(jnp.minimum(lv, 20.0))))
    return ref_mean, ref_logvar


if __name__ == "__main__":
    # Module hyperparameters (small, consistent with the forward pass).
    ZDIMS = 16
    hidden_size_layer_1 = 16
    hidden_size_layer_2 = 16
    hid_dim = hidden_size_layer_1 * 2 + hidden_size_layer_2 * 2   # 64
    B = 8

    key = jax.random.PRNGKey(0)
    k_x, k_wl, k_bl, k_wm, k_bm, k_wv, k_bv, k_xb = jax.random.split(key, 8)

    # PyTorch Linear stores W as (out, in); create that way then transpose.
    bound = 1.0 / jnp.sqrt(hid_dim)
    # hidden_to_linear -- present in __init__ but unused in forward()
    _w_linear = jax.random.uniform(k_wl, (hid_dim, hid_dim), jnp.float32, -bound, bound)
    _b_linear = jax.random.uniform(k_bl, (hid_dim,), jnp.float32, -bound, bound)
    w_mean_oi = jax.random.uniform(k_wm, (ZDIMS, hid_dim), jnp.float32, -bound, bound)
    b_mean = jax.random.uniform(k_bm, (ZDIMS,), jnp.float32, -bound, bound)
    w_logvar_oi = jax.random.uniform(k_wv, (ZDIMS, hid_dim), jnp.float32, -bound, bound)
    b_logvar = jax.random.uniform(k_bv, (ZDIMS,), jnp.float32, -bound, bound)

    # Glue: fuse the two linears into one (H, 2Z) weight and one (1, 2Z) bias.
    w_fused = jnp.concatenate([w_mean_oi.T, w_logvar_oi.T], axis=1)   # (64, 32)
    b_fused = jnp.concatenate([b_mean, b_logvar]).reshape(1, -1)      # (1, 32)

    # --- Default path (small batch, single VMEM block, no grid) ---
    cell_output = jax.random.normal(k_x, (B, hid_dim), jnp.float32)
    mean, mean2, logvar = lambda_legacy_forward(cell_output, w_fused, b_fused, ZDIMS)
    jax.block_until_ready((mean, mean2, logvar))

    ref_mean, ref_logvar = _reference(cell_output, w_mean_oi, b_mean, w_logvar_oi, b_logvar)
    assert jnp.allclose(mean, ref_mean, atol=1e-5, rtol=1e-5)
    assert jnp.allclose(mean2, ref_mean, atol=1e-5, rtol=1e-5)
    assert jnp.allclose(logvar, ref_logvar, atol=1e-5, rtol=1e-5)

    # --- Grid path validation (forced small row_tile, non-divisible B exercises
    #     the pl.cdiv ragged last tile).  Production default keeps row_tile=8192. ---
    Bb = 520
    cell_output_b = jax.random.normal(k_xb, (Bb, hid_dim), jnp.float32)
    mean_b, _, logvar_b = lambda_legacy_forward(cell_output_b, w_fused, b_fused, ZDIMS,
                                                row_tile=256)
    jax.block_until_ready((mean_b, logvar_b))

    ref_mean_b, ref_logvar_b = _reference(cell_output_b, w_mean_oi, b_mean,
                                          w_logvar_oi, b_logvar)
    assert jnp.allclose(mean_b, ref_mean_b, atol=1e-5, rtol=1e-5)
    assert jnp.allclose(logvar_b, ref_logvar_b, atol=1e-5, rtol=1e-5)

    # Sanity: a moderate batch (512) now goes through the single-block path with
    # the default row_tile=8192 (no per-step grid overhead).
    mean_m, _, logvar_m = lambda_legacy_forward(cell_output_b[:512], w_fused, b_fused, ZDIMS)
    jax.block_until_ready((mean_m, logvar_m))
    assert jnp.allclose(mean_m, ref_mean_b[:512], atol=1e-5, rtol=1e-5)
    assert jnp.allclose(logvar_m, ref_logvar_b[:512], atol=1e-5, rtol=1e-5)

    print("KERNEL_OK")
</pallas_src>

<mosaic_0001>
module attributes {stable_mosaic.version = 11 : i64} {
  func.func @_lambda_fused_kernel(%arg0: memref<8x64xf32, #tpu.memory_space<vmem>>, %arg1: memref<64x128xf32, #tpu.memory_space<vmem>>, %arg2: memref<1x128xf32, #tpu.memory_space<vmem>>, %arg3: memref<8x128xf32, #tpu.memory_space<vmem>>) attributes {dimension_semantics = [], scalar_prefetch = 0 : i64, scratch_operands = 0 : i64, tpu.core_type = #tpu.core_type<tc>} {
    %c0 = arith.constant 0 : index
    %c0_0 = arith.constant 0 : index
    %0 = vector.load %arg0[%c0, %c0_0] : memref<8x64xf32, #tpu.memory_space<vmem>>, vector<8x64xf32>
    %c0_1 = arith.constant 0 : index
    %c0_2 = arith.constant 0 : index
    %1 = vector.load %arg1[%c0_1, %c0_2] : memref<64x128xf32, #tpu.memory_space<vmem>>, vector<64x128xf32>
    %cst = arith.constant dense<0.000000e+00> : vector<8x128xf32>
    %2 = tpu.matmul %0, %1, %cst {dimension_numbers = #tpu.dot_dimension_numbers<[1], [0], [0], [1], [0, 0, 1, 1], [], []>} : vector<8x64xf32>, vector<64x128xf32>, vector<8x128xf32> -> vector<8x128xf32>
    %c0_3 = arith.constant 0 : index
    %c0_4 = arith.constant 0 : index
    %3 = vector.load %arg2[%c0_3, %c0_4] : memref<1x128xf32, #tpu.memory_space<vmem>>, vector<1x128xf32>
    %4 = vector.broadcast %3 : vector<1x128xf32> to vector<8x128xf32>
    %5 = arith.addf %2, %4 : vector<8x128xf32>
    %cst_5 = arith.constant 2.000000e+01 : f32
    %6 = vector.broadcast %cst_5 : f32 to vector<8x128xf32>
    %7 = arith.cmpf ogt, %5, %6 : vector<8x128xf32>
    %cst_6 = arith.constant 2.000000e+01 : f32
    %8 = vector.broadcast %cst_6 : f32 to vector<8x128xf32>
    %9 = arith.minimumf %5, %8 : vector<8x128xf32>
    %10 = math.exp %9 : vector<8x128xf32>
    %11 = math.log1p %10 : vector<8x128xf32>
    %12 = arith.select %7, %5, %11 : vector<8x128xi1>, vector<8x128xf32>
    %13 = tpu.iota {dimensions = array<i32: 1>} : vector<8x128xi32>
    %c16_i32 = arith.constant 16 : i32
    %14 = vector.broadcast %c16_i32 : i32 to vector<8x128xi32>
    %15 = arith.cmpi sge, %13, %14 : vector<8x128xi32>
    %16 = arith.select %15, %12, %5 : vector<8x128xi1>, vector<8x128xf32>
    %c0_7 = arith.constant 0 : index
    %c0_8 = arith.constant 0 : index
    %17 = vector.load %arg3[%c0_7, %c0_8] : memref<8x128xf32, #tpu.memory_space<vmem>>, vector<8x128xf32>
    tpu.vector_store %arg3[%c0_7, %c0_8], %16 {strides = array<i32>} : memref<8x128xf32, #tpu.memory_space<vmem>>, vector<8x128xf32>,
    return
  }
}

</mosaic_0001>

<bundles_post_ra>
// kernel: tpu_custom_call.1
= control target key start
LH: loop header
LB: loop body
LE: loop exit
PB: predicated region body
PF: predicated region fallthrough
CT: control target
= control target key end

     0   :  { %8 = vsyncpa [#allocation3], 0  ;;  %s245_s0 = inlined_call_operand.hbm [shape: f32[8,64], index: 0, kind: input, shape index: {}]   ;;  %s246_s1 = inlined_call_operand.hbm [shape: f32[64,128], index: 1, kind: input, shape index: {}]   ;;  %s247_s2 = inlined_call_operand.vmem [shape: f32[1,128], index: 2, kind: input, shape index: {}]   ;;  %s248_s3 = inlined_call_operand.hbm [shape: f32[8,128], index: 3, kind: output, shape index: {}]  }
   0x1   :  { %9 = vsyncpa [#allocation6], 0 }
   0x2   :  { %10 = vsyncpa [#allocation4], 0  ;;  %s16_s14 = sshll.u32 %s245_s0, 4  ;;  %s208_s15 = smov [#allocation2]   ;;  %s17_s14 = int_to_ptr.hbm [resolvable:$true] %s16_s14 }
   0x3   :  { %s18_s16 = sshll.u32 %s208_s15, 4  ;;  %s26_s19 = sshll.u32 %s246_s1, 4  ;;  %s19_s16 = int_to_ptr.vmem [resolvable:$true] %s18_s16  ;;  %s27_s19 = int_to_ptr.hbm [resolvable:$true] %s26_s19 }
   0x4   :  { %21 = dma.hbm_to_vmem [thread:$0]  %s17_s14, 128, %s19_s16, [#allocation3]  }
   0x5   :  { %s209_s20 = smov [#allocation5]   ;;  %s210_s22 = smov 128  }
   0x6   :  { %s28_s21 = sshll.u32 %s209_s20, 4  ;;  %s211_s23 = smov 8   ;;  %s29_s21 = int_to_ptr.vmem [resolvable:$true] %s28_s21 }
   0x7   :  { %34 = dma.hbm_to_vmem [thread:$0]  %s27_s19, 1024, %s29_s21, [#allocation6], %s210_s22, %s210_s22, %s211_s23  }
   0x8   :  { %202 = dma.done.wait [#allocation3], 128  }
   0x9   :  { %203 = vsyncadd [#allocation3], 4294967168 }
   0xa   :  { %204 = dma.done.wait [#allocation6], 1024  }
   0xb   :  { %205 = vsyncadd [#allocation6], 4294966272  ;;  %v53_v0 = vld [vmem:[#allocation5 + $0x38] sm:$0xff]  ;;  %v52_v1 = vld [vmem:[#allocation5 + $0x30] sm:$0xff]  ;;  %vm58_vm0 = vcmask 523264   ;;  %v96_v17 = vlaneseq  ;;  %s212_s24 = smov [#allocation7]  }
   0xc   :  { %70 = vmatpush.msra.mxu0 %v53_v0  ;;  %v51_v2 = vld [vmem:[#allocation5 + $0x28] sm:$0xff]  ;;  %v50_v3 = vld [vmem:[#allocation5 + $0x20] sm:$0xff]  ;;  %v49_v4 = vld [vmem:[#allocation5 + $0x18] sm:$0xff]  ;;  %s106_s25 = sshll.u32 %s212_s24, 4  ;;  %s108_s27 = sshll.u32 %s248_s3, 4  ;;  %s107_s25 = int_to_ptr.vmem [resolvable:$true] %s106_s25  ;;  %s109_s27 = int_to_ptr.hbm [resolvable:$true] %s108_s27 }
   0xd   :  { %v48_v5 = vld [vmem:[#allocation5 + $0x10] sm:$0xff]  ;;  %v47_v6 = vld [vmem:[#allocation5 + $0x8] sm:$0xff]  ;;  %v46_v7 = vld [vmem:[#allocation5] sm:$0xff]  ;;  %v97_v20 = vand.u32 127, %v96_v17 }
   0xe   :  { %71 = vmatpush.msra.mxu0 %v52_v1  ;;  %v45_v8 = vld [vmem:[#allocation2] sm:$0xff] }
   0xf   :  { %v125_v9 = vld [vmem:[%s247_s2] ss:$0 sm:$0xff]  ;;  %vm98_vm2 = vcmp.ge.s32.totalorder %v97_v20, 16 }
  0x10   :  { %72 = vmatpush.msra.mxu0 %v51_v2 }
  0x12   :  { %73 = vmatpush.msra.mxu0 %v50_v3 }
  0x14   :  { %74 = vmatpush.msra.mxu0 %v49_v4 }
  0x16   :  { %75 = vmatpush.msra.mxu0 %v48_v5 }
  0x18   :  { %76 = vmatpush.msra.mxu0 %v47_v6 }
  0x1a   :  { %77 = vmatpush.msra.mxu0 %v46_v7 }
  0x1b   :  { %119 = vmatmul.msk.f32.vlgmr.msra.gmra.mxu0 %vm58_vm0, %v45_v8 }
  0x98   :  { %v79_v10 = vpop.f32.mrf.mxu0 }
  0x99   :  { %v80_v11 = vadd.f32 %v125_v9, %v79_v10 }
  0x9b   :  { %v83_v12 = vmin.f32 %v80_v11, 20.0  ;;  %vm82_vm3 = vcmp.gt.f32.partialorder %v80_v11, 20.0 }
  0x9d   :  { %v84_v13 = vmul.f32 1.442695, %v83_v12 }
  0x9f   :  { %126 = vpow2.f32 %v84_v13 }
  0xa5   :  { %v127_v14 = vpop.eup %126 }
  0xa6   :  { %v86_v15 = vadd.f32 1.0, %v127_v14  ;;  %v89_v16 = vmul.f32 -0.5, %v127_v14  ;;  %v92_v19 = vand.u32 2147483647, %v127_v14 }
  0xa8   :  { %128 = vlog2.f32 %v86_v15  ;;  %v90_v18 = vadd.f32 1.0, %v89_v16  ;;  %vm93_vm1 = vcmp.lt.f32.partialorder %v92_v19, 0.0004427343 }
  0xaa   :  { %v91_v23 = vmul.f32 %v127_v14, %v90_v18 }
  0xae   :  { %v129_v21 = vpop.eup %128 }
  0xaf   :  { %v88_v22 = vmul.f32 0.6931472, %v129_v21 }
  0xb1   :  { %v94_v24 = vsel %vm93_vm1, %v91_v23, %v88_v22 }
  0xb2   :  { %v95_v25 = vsel %vm82_vm3, %v80_v11, %v94_v24 }
  0xb3   :  { %v99_v26 = vsel %vm98_vm2, %v95_v25, %v80_v11 }
  0xb4   :  { %100 = vst [vmem:[#allocation7] sm:$0xff] %v99_v26 }
  0xb5   :  { %111 = dma.vmem_to_hbm [thread:$0]  %s107_s25, 128, %s109_s27, [#allocation4]  }
  0xb6   :  { %206 = dma.done.wait [#allocation4], 128  }
  0xb7   :  { %207 = vsyncadd [#allocation4], 4294967168 }
  0xb8   :  { %116 = vsyncpa [#allocation3], 1 }
  0xb9   :  { %117 = vsyncpa [#allocation6], 1 }
  0xba   :  { %118 = vsyncpa [#allocation4], 1 }

</bundles_post_ra>
